<compile_context>
chip_gen: v6e
topology: v6e:2x2x1
jax: 0.10.0
libtpu: 0.0.40
codegen_flags: <defaults>
</compile_context>

<pallas_src>
import functools

import jax
import jax.numpy as jnp
from jax.experimental import pallas as pl
from jax.experimental.pallas import tpu as pltpu


# ----------------------------------------------------------------------------
# Per-tile RGCNConv + ReLU (shared by both kernels).  Returns f32 [TM, Dout].
# ----------------------------------------------------------------------------
def _rgcn_tile(h_ref, adj_ref, w_rel_ref, w_root_ref, b_ref, *, tm, num_rel):
    i = pl.program_id(0)
    row0 = pl.multiple_of(i * tm, tm)
    h_all = h_ref[...]                                    # [N, Din] bf16 (resident across tiles)
    h_tile = h_ref[pl.ds(row0, tm), :]                    # [TM, Din] bf16 (this tile's dst rows)
    adj_t = adj_ref[...]                                  # [R, TM, N] bf16 (this tile only)
    n = h_all.shape[0]
    din = h_all.shape[1]

    # (1) All relations aggregated in ONE MXU matmul, f32 accumulate; cast to bf16
    #     immediately so the f32 intermediate stays tile-local and small.
    s = jnp.dot(adj_t.reshape(num_rel * tm, n), h_all,
                preferred_element_type=jnp.float32)       # [R*TM, Din] f32
    s = s.reshape(num_rel, tm, din).astype(jnp.bfloat16)  # [R, TM, Din] bf16

    # (2) Projection: root term + static per-relation accumulate (R small) --
    #     avoids the non-lane-aligned feature concatenate entirely.
    out = jnp.dot(h_tile, w_root_ref[...], preferred_element_type=jnp.float32)
    for r in range(num_rel):                              # static unroll
        out = out + jnp.dot(s[r], w_rel_ref[r], preferred_element_type=jnp.float32)
    out = out + b_ref[...]
    return jnp.maximum(out, 0.0)                          # fused F.relu (f32)


def rgcn_layer_kernel(h_ref, adj_ref, w_rel_ref, w_root_ref, b_ref, o_ref,
                      *, tm, num_rel):
    o_ref[...] = _rgcn_tile(h_ref, adj_ref, w_rel_ref, w_root_ref, b_ref,
                            tm=tm, num_rel=num_rel).astype(o_ref.dtype)


def rgcn_head_kernel(h_ref, adj_ref, w_rel_ref, w_root_ref, b_ref,
                     lw_ref, lb_ref, o_ref, *, tm, num_rel):
    act = _rgcn_tile(h_ref, adj_ref, w_rel_ref, w_root_ref, b_ref,
                     tm=tm, num_rel=num_rel)              # [TM, Dout] f32
    # Linear on the lane-padded (128-class) weights.  Padded lanes carry a -1e30
    # bias so they vanish from the log_softmax max/sum below.
    logits = jnp.dot(act.astype(jnp.bfloat16), lw_ref[...],
                     preferred_element_type=jnp.float32) + lb_ref[...]
    m = jnp.max(logits, axis=1, keepdims=True)
    shifted = logits - m
    lse = jnp.log(jnp.sum(jnp.exp(shifted), axis=1, keepdims=True))
    o_ref[...] = shifted - lse                            # lane-dense (TM, 128) store


# ----------------------------------------------------------------------------
# Dense per-relation mean-normalized adjacency.
# Module passes flow='target_to_source' to RGCNConv: aggregate at edge_index[0]
# with messages coming from edge_index[1]; aggr='mean'.  Normalization in f32.
# ----------------------------------------------------------------------------
def build_rel_adjacency(edge_index, edge_type, num_nodes, num_rel):
    dst = edge_index[0]                                   # aggregation index
    src = edge_index[1]                                   # message source
    adj = jnp.zeros((num_rel, num_nodes, num_nodes), jnp.float32)
    adj = adj.at[edge_type, dst, src].add(1.0)
    deg = jnp.sum(adj, axis=2, keepdims=True)             # per-relation degree at dst
    return adj / jnp.maximum(deg, 1.0)                    # mean aggregation


def _pick_row_tile(n):
    for cand in (256, 128, 64, 32, 16, 8):
        if n % cand == 0:
            return cand
    return n


# ----------------------------------------------------------------------------
# Full Net forward: one tiled pallas_call per conv layer, head fused in the last.
# ----------------------------------------------------------------------------
def net_forward(x, edge_index, edge_type, params, metapath_length, tm=None):
    if metapath_length < 1:
        raise ValueError("metapath_length must be >= 1")

    num_rel = params["conv1_w_rel"].shape[0]
    n, _ = x.shape
    lin_in, c = params["lin_w"].shape
    c_pad = ((c + 127) // 128) * 128                      # lane-dense output width

    if tm is None:
        tm = _pick_row_tile(n)
    assert n % tm == 0, f"row tile {tm} must divide num_nodes {n}"
    n_tiles = n // tm

    adj = build_rel_adjacency(edge_index, edge_type, n, num_rel).astype(jnp.bfloat16)

    # Padded classifier: zero weights / -1e30 bias on the padded logit lanes.
    lin_w = jnp.zeros((lin_in, c_pad), jnp.bfloat16).at[:, :c].set(
        params["lin_w"].astype(jnp.bfloat16))
    lin_b = jnp.full((1, c_pad), -1e30, jnp.float32).at[0, :c].set(
        params["lin_b"].astype(jnp.float32))

    # Rough per-step footprint -> scoped VMEM limit (v5e default is only 16 MiB;
    # cap at v7x's 64 MiB physical per TC).
    hid = params["conv1_w_root"].shape[1]
    dmax = max(x.shape[1], hid, params["conv2_w_root"].shape[1])
    adj_tile_bytes = num_rel * tm * n * 2
    misc_bytes = (2 * n * dmax * 2                         # h in + h out
                  + num_rel * dmax * dmax * 2 + dmax * dmax * 2   # conv weights
                  + lin_in * c_pad * 2 + tm * c_pad * 4           # head weights + out tile
                  + num_rel * tm * dmax * 4)                      # f32 aggregation
    vmem_limit = max(32 << 20, min(2 * adj_tile_bytes + 2 * misc_bytes + (4 << 20),
                                   64 << 20))
    cparams = pltpu.CompilerParams(dimension_semantics=("parallel",),
                                   vmem_limit_bytes=vmem_limit)

    def full(shape):                                       # block resident across all tiles
        return pl.BlockSpec(shape, lambda i, _s=shape: (0,) * len(_s))

    adj_spec = pl.BlockSpec((num_rel, tm, n), lambda i: (0, i, 0))

    h = x.astype(jnp.bfloat16)
    for layer in range(metapath_length):
        if layer == 0:
            w_rel, w_root, b = (params["conv1_w_rel"], params["conv1_w_root"],
                                params["conv1_b"])
        else:
            w_rel, w_root, b = (params["conv2_w_rel"], params["conv2_w_root"],
                                params["conv2_b"])
        d_in, d_out = w_root.shape
        w_rel = w_rel.astype(jnp.bfloat16)
        w_root = w_root.astype(jnp.bfloat16)
        b = b.astype(jnp.float32).reshape(1, -1)

        common_specs = [full((n, d_in)), adj_spec,
                        full((num_rel, d_in, d_out)), full((d_in, d_out)),
                        full((1, d_out))]
        is_last = layer == metapath_length - 1

        if not is_last:
            h = pl.pallas_call(
                functools.partial(rgcn_layer_kernel, tm=tm, num_rel=num_rel),
                out_shape=jax.ShapeDtypeStruct((n, d_out), jnp.bfloat16),
                grid=(n_tiles,),
                in_specs=common_specs,
                out_specs=pl.BlockSpec((tm, d_out), lambda i: (i, 0)),
                compiler_params=cparams,
            )(h, adj, w_rel, w_root, b)
        else:
            out_pad = pl.pallas_call(
                functools.partial(rgcn_head_kernel, tm=tm, num_rel=num_rel),
                out_shape=jax.ShapeDtypeStruct((n, c_pad), jnp.float32),
                grid=(n_tiles,),
                in_specs=common_specs + [full((lin_in, c_pad)), full((1, c_pad))],
                out_specs=pl.BlockSpec((tm, c_pad), lambda i: (i, 0)),
                compiler_params=cparams,
            )(h, adj, w_rel, w_root, b, lin_w, lin_b)
            return out_pad[:, :c]                          # drop padded logit lanes


# ----------------------------------------------------------------------------
# Pure-JAX f32 reference (matches the PyTorch Net semantics) for verification.
# ----------------------------------------------------------------------------
def reference_forward(x, edge_index, edge_type, params, metapath_length):
    num_rel = params["conv1_w_rel"].shape[0]
    adj = build_rel_adjacency(edge_index, edge_type, x.shape[0], num_rel)

    def conv(h, w_rel, w_root, b):
        out = h @ w_root + b
        for r in range(num_rel):
            out = out + (adj[r] @ h) @ w_rel[r]
        return jax.nn.relu(out)

    h = x
    for layer in range(metapath_length):
        if layer == 0:
            h = conv(h, params["conv1_w_rel"], params["conv1_w_root"], params["conv1_b"])
        else:
            h = conv(h, params["conv2_w_rel"], params["conv2_w_root"], params["conv2_b"])
    logits = h @ params["lin_w"] + params["lin_b"]
    return jax.nn.log_softmax(logits, axis=1)


if __name__ == "__main__":
    # Small, forward-consistent sizes.
    N = 16            # number of graph nodes
    E = 48            # number of edges
    input_dim = 8
    hidden_dim = 32
    num_rel = 3
    output_dim = 32
    ll_output_dim = 8
    n_layers = 2          # unused by forward (kept for parity with __init__)
    metapath_length = 2   # layer 0 -> conv1, layer 1 -> conv2

    key = jax.random.PRNGKey(0)
    keys = jax.random.split(key, 10)

    params = {
        "conv1_w_rel":  0.1 * jax.random.normal(keys[0], (num_rel, input_dim, hidden_dim), jnp.float32),
        "conv1_w_root": 0.1 * jax.random.normal(keys[1], (input_dim, hidden_dim), jnp.float32),
        "conv1_b":      0.1 * jax.random.normal(keys[2], (hidden_dim,), jnp.float32),
        "conv2_w_rel":  0.1 * jax.random.normal(keys[3], (num_rel, hidden_dim, output_dim), jnp.float32),
        "conv2_w_root": 0.1 * jax.random.normal(keys[4], (hidden_dim, output_dim), jnp.float32),
        "conv2_b":      0.1 * jax.random.normal(keys[5], (output_dim,), jnp.float32),
        # Linear stored as [in, out] (= torch weight.T), so y = x @ W + b.
        "lin_w":        0.1 * jax.random.normal(keys[6], (output_dim, ll_output_dim), jnp.float32),
        "lin_b":        0.1 * jax.random.normal(keys[7], (ll_output_dim,), jnp.float32),
    }

    x = jax.random.normal(keys[8], (N, input_dim), jnp.float32)
    ek0, ek1, ek2 = jax.random.split(keys[9], 3)
    edge_index = jnp.stack([
        jax.random.randint(ek0, (E,), 0, N),
        jax.random.randint(ek1, (E,), 0, N),
    ], axis=0).astype(jnp.int32)                 # [2, E]
    edge_type = jax.random.randint(ek2, (E,), 0, num_rel).astype(jnp.int32)  # [E]

    # tm=8 -> 2 destination-row tiles, exercises the grid / pipelining path.
    out = net_forward(x, edge_index, edge_type, params, metapath_length, tm=8)
    out = jax.block_until_ready(out)
    ref = reference_forward(x, edge_index, edge_type, params, metapath_length)

    assert out.shape == (N, ll_output_dim)
    # log_softmax rows should sum to ~1 after exp
    assert jnp.allclose(jnp.sum(jnp.exp(out), axis=1), 1.0, atol=1e-3)
    # bf16-operand / f32-accumulate kernel vs f32 reference
    assert jnp.allclose(out, ref, atol=5e-2, rtol=5e-2), \
        f"max abs err {jnp.max(jnp.abs(out - ref))}"
    print("KERNEL_OK")
</pallas_src>

<mosaic_0001>
module attributes {stable_mosaic.version = 11 : i64} {
  func.func @rgcn_layer_kernel(%arg0: i32, %arg1: memref<16x8xbf16, #tpu.memory_space<vmem>>, %arg2: memref<3x8x16xbf16, #tpu.memory_space<vmem>>, %arg3: memref<3x8x32xbf16, #tpu.memory_space<vmem>>, %arg4: memref<8x32xbf16, #tpu.memory_space<vmem>>, %arg5: memref<1x32xf32, #tpu.memory_space<vmem>>, %arg6: memref<8x32xbf16, #tpu.memory_space<vmem>>) attributes {dimension_semantics = [#tpu.dimension_semantics<parallel>], iteration_bounds = array<i64: 2>, scalar_prefetch = 0 : i64, scratch_operands = 0 : i64, tpu.core_type = #tpu.core_type<tc>, window_params = [{pipeline_mode = #tpu.pipeline_mode<synchronous>, transform_indices = @transform_0, window_bounds = array<i64: 16, 8>}, {transform_indices = @transform_1, window_bounds = array<i64: 3, 8, 16>}, {pipeline_mode = #tpu.pipeline_mode<synchronous>, transform_indices = @transform_2, window_bounds = array<i64: 3, 8, 32>}, {pipeline_mode = #tpu.pipeline_mode<synchronous>, transform_indices = @transform_3, window_bounds = array<i64: 8, 32>}, {pipeline_mode = #tpu.pipeline_mode<synchronous>, transform_indices = @transform_4, window_bounds = array<i64: 1, 32>}, {transform_indices = @transform_5, window_bounds = array<i64: 8, 32>}]} {
    %c8_i32 = arith.constant 8 : i32
    %0 = arith.muli %arg0, %c8_i32 : i32
    %1 = tpu.assume_multiple %0, 8 : i32
    %c0 = arith.constant 0 : index
    %c0_0 = arith.constant 0 : index
    %2 = vector.load %arg1[%c0, %c0_0] : memref<16x8xbf16, #tpu.memory_space<vmem>>, vector<16x8xbf16>
    %3 = arith.index_cast %1 : i32 to index
    %c0_1 = arith.constant 0 : index
    %4 = vector.load %arg1[%3, %c0_1] : memref<16x8xbf16, #tpu.memory_space<vmem>>, vector<8x8xbf16>
    %c0_2 = arith.constant 0 : index
    %c0_3 = arith.constant 0 : index
    %c0_4 = arith.constant 0 : index
    %5 = vector.load %arg2[%c0_2, %c0_3, %c0_4] : memref<3x8x16xbf16, #tpu.memory_space<vmem>>, vector<3x8x16xbf16>
    %6 = vector.shape_cast %5 : vector<3x8x16xbf16> to vector<24x16xbf16>
    %cst = arith.constant dense<0.000000e+00> : vector<24x8xf32>
    %7 = tpu.matmul %6, %2, %cst {dimension_numbers = #tpu.dot_dimension_numbers<[1], [0], [0], [1], [0, 0, 1, 1], [], []>} : vector<24x16xbf16>, vector<16x8xbf16>, vector<24x8xf32> -> vector<24x8xf32>
    %8 = vector.shape_cast %7 : vector<24x8xf32> to vector<3x8x8xf32>
    %9 = arith.truncf %8 : vector<3x8x8xf32> to vector<3x8x8xbf16>
    %c0_5 = arith.constant 0 : index
    %c0_6 = arith.constant 0 : index
    %10 = vector.load %arg4[%c0_5, %c0_6] : memref<8x32xbf16, #tpu.memory_space<vmem>>, vector<8x32xbf16>
    %cst_7 = arith.constant dense<0.000000e+00> : vector<8x32xf32>
    %11 = tpu.matmul %4, %10, %cst_7 {dimension_numbers = #tpu.dot_dimension_numbers<[1], [0], [0], [1], [0, 0, 1, 1], [], []>} : vector<8x8xbf16>, vector<8x32xbf16>, vector<8x32xf32> -> vector<8x32xf32>
    %12 = vector.extract_strided_slice %9 {offsets = [0, 0, 0], sizes = [1, 8, 8], strides = [1, 1, 1]} : vector<3x8x8xbf16> to vector<1x8x8xbf16>
    %13 = vector.shape_cast %12 : vector<1x8x8xbf16> to vector<8x8xbf16>
    %c0_8 = arith.constant 0 : index
    %c0_9 = arith.constant 0 : index
    %c0_10 = arith.constant 0 : index
    %14 = vector.load %arg3[%c0_8, %c0_9, %c0_10] : memref<3x8x32xbf16, #tpu.memory_space<vmem>>, vector<1x8x32xbf16>
    %15 = vector.shape_cast %14 : vector<1x8x32xbf16> to vector<8x32xbf16>
    %cst_11 = arith.constant dense<0.000000e+00> : vector<8x32xf32>
    %16 = tpu.matmul %13, %15, %cst_11 {dimension_numbers = #tpu.dot_dimension_numbers<[1], [0], [0], [1], [0, 0, 1, 1], [], []>} : vector<8x8xbf16>, vector<8x32xbf16>, vector<8x32xf32> -> vector<8x32xf32>
    %17 = arith.addf %11, %16 : vector<8x32xf32>
    %18 = vector.extract_strided_slice %9 {offsets = [1, 0, 0], sizes = [1, 8, 8], strides = [1, 1, 1]} : vector<3x8x8xbf16> to vector<1x8x8xbf16>
    %19 = vector.shape_cast %18 : vector<1x8x8xbf16> to vector<8x8xbf16>
    %c1 = arith.constant 1 : index
    %c0_12 = arith.constant 0 : index
    %c0_13 = arith.constant 0 : index
    %20 = vector.load %arg3[%c1, %c0_12, %c0_13] : memref<3x8x32xbf16, #tpu.memory_space<vmem>>, vector<1x8x32xbf16>
    %21 = vector.shape_cast %20 : vector<1x8x32xbf16> to vector<8x32xbf16>
    %cst_14 = arith.constant dense<0.000000e+00> : vector<8x32xf32>
    %22 = tpu.matmul %19, %21, %cst_14 {dimension_numbers = #tpu.dot_dimension_numbers<[1], [0], [0], [1], [0, 0, 1, 1], [], []>} : vector<8x8xbf16>, vector<8x32xbf16>, vector<8x32xf32> -> vector<8x32xf32>
    %23 = arith.addf %17, %22 : vector<8x32xf32>
    %24 = vector.extract_strided_slice %9 {offsets = [2, 0, 0], sizes = [1, 8, 8], strides = [1, 1, 1]} : vector<3x8x8xbf16> to vector<1x8x8xbf16>
    %25 = vector.shape_cast %24 : vector<1x8x8xbf16> to vector<8x8xbf16>
    %c2 = arith.constant 2 : index
    %c0_15 = arith.constant 0 : index
    %c0_16 = arith.constant 0 : index
    %26 = vector.load %arg3[%c2, %c0_15, %c0_16] : memref<3x8x32xbf16, #tpu.memory_space<vmem>>, vector<1x8x32xbf16>
    %27 = vector.shape_cast %26 : vector<1x8x32xbf16> to vector<8x32xbf16>
    %cst_17 = arith.constant dense<0.000000e+00> : vector<8x32xf32>
    %28 = tpu.matmul %25, %27, %cst_17 {dimension_numbers = #tpu.dot_dimension_numbers<[1], [0], [0], [1], [0, 0, 1, 1], [], []>} : vector<8x8xbf16>, vector<8x32xbf16>, vector<8x32xf32> -> vector<8x32xf32>
    %29 = arith.addf %23, %28 : vector<8x32xf32>
    %c0_18 = arith.constant 0 : index
    %c0_19 = arith.constant 0 : index
    %30 = vector.load %arg5[%c0_18, %c0_19] : memref<1x32xf32, #tpu.memory_space<vmem>>, vector<1x32xf32>
    %31 = vector.broadcast %30 : vector<1x32xf32> to vector<8x32xf32>
    %32 = arith.addf %29, %31 : vector<8x32xf32>
    %cst_20 = arith.constant 0.000000e+00 : f32
    %33 = vector.broadcast %cst_20 : f32 to vector<8x32xf32>
    %34 = arith.maximumf %32, %33 : vector<8x32xf32>
    %35 = arith.truncf %34 : vector<8x32xf32> to vector<8x32xbf16>
    %c0_21 = arith.constant 0 : index
    %c0_22 = arith.constant 0 : index
    %36 = vector.load %arg6[%c0_21, %c0_22] : memref<8x32xbf16, #tpu.memory_space<vmem>>, vector<8x32xbf16>
    tpu.vector_store %arg6[%c0_21, %c0_22], %35 {strides = array<i32>} : memref<8x32xbf16, #tpu.memory_space<vmem>>, vector<8x32xbf16>,
    return
  }
  func.func @transform_0(%arg0: i32) -> (i32, i32) {
    %c0_i32 = arith.constant 0 : i32
    %c0_i32_0 = arith.constant 0 : i32
    %c0_i32_1 = arith.constant 0 : i32
    return %c0_i32, %c0_i32_0 : i32, i32
  }
  func.func @transform_1(%arg0: i32) -> (i32, i32, i32) {
    %c0_i32 = arith.constant 0 : i32
    %c0_i32_0 = arith.constant 0 : i32
    %c0_i32_1 = arith.constant 0 : i32
    return %c0_i32, %arg0, %c0_i32_0 : i32, i32, i32
  }
  func.func @transform_2(%arg0: i32) -> (i32, i32, i32) {
    %c0_i32 = arith.constant 0 : i32
    %c0_i32_0 = arith.constant 0 : i32
    %c0_i32_1 = arith.constant 0 : i32
    %c0_i32_2 = arith.constant 0 : i32
    return %c0_i32, %c0_i32_0, %c0_i32_1 : i32, i32, i32
  }
  func.func @transform_3(%arg0: i32) -> (i32, i32) {
    %c0_i32 = arith.constant 0 : i32
    %c0_i32_0 = arith.constant 0 : i32
    %c0_i32_1 = arith.constant 0 : i32
    return %c0_i32, %c0_i32_0 : i32, i32
  }
  func.func @transform_4(%arg0: i32) -> (i32, i32) {
    %c0_i32 = arith.constant 0 : i32
    %c0_i32_0 = arith.constant 0 : i32
    %c0_i32_1 = arith.constant 0 : i32
    return %c0_i32, %c0_i32_0 : i32, i32
  }
  func.func @transform_5(%arg0: i32) -> (i32, i32) {
    %c0_i32 = arith.constant 0 : i32
    %c0_i32_0 = arith.constant 0 : i32
    return %arg0, %c0_i32 : i32, i32
  }
}

</mosaic_0001>

<bundles_post_ra>
// kernel: tpu_custom_call.1
= control target key start
LH: loop header
LB: loop body
LE: loop exit
PB: predicated region body
PF: predicated region fallthrough
CT: control target
= control target key end

     0   :  { %10 = vsyncpa [#allocation3], 0  ;;  %s1041_s0 = inlined_call_operand.vmem [shape: bf16[16,8], index: 0, kind: input, shape index: {}]   ;;  %s1042_s1 = inlined_call_operand.hbm [shape: bf16[3,16,16], index: 1, kind: input, shape index: {}]   ;;  %s1043_s2 = inlined_call_operand.vmem [shape: bf16[3,8,32], index: 2, kind: input, shape index: {}]   ;;  %s1044_s3 = inlined_call_operand.vmem [shape: bf16[8,32], index: 3, kind: input, shape index: {}]   ;;  %s1045_s4 = inlined_call_operand.vmem [shape: f32[1,32], index: 4, kind: input, shape index: {}]   ;;  %s1046_s5 = inlined_call_operand.hbm [shape: bf16[16,32], index: 5, kind: output, shape index: {}]  }
   0x1   :  { %12 = vsyncpa [#allocation3 + $0x1], 0 }
   0x2   :  { %13 = vsyncpa [#allocation4], 0 }
   0x3   :  { %15 = vsyncpa [#allocation4 + $0x1], 0  ;;  %s870_s18 = smov 0   ;;  %s872_s19 = smov 0  }
   0x4   :  { %s874_s20 = smov 0   ;;  %s876_s21 = smov 0  }
   0x5 LB: > { %s891_s22 = sadd.s32 4294967295, %s831_s21   ;;  %s618_s23 = sadd.s32 4294967294, %s831_s21   ;;  %s831_s21 = sphi %s876_s21, %s1061_s21   ;;  %s827_s20 = sphi %s874_s20, %s1060_s20   ;;  %s823_s19 = sphi %s872_s19, %s1059_s19   ;;  %s819_s18 = sphi %s870_s18, %s1058_s18  }
   0x6   : > { %s895_s24 = sadd.s32 1, %s831_s21   ;;  %s49_s25 = sadd.s32 1, %s827_s20 }
   0x7   : > { %s46_s26 = ssub.s32 %s831_s21, %s895_s24  ;;  %p56_p0 = scmp.ne.s32.totalorder %s827_s20, %s823_s19 }
   0x8   : > { %p47_p1 = scmp.eq.s32.totalorder %s46_s26, 0  ;;  %p57_p2 = scmp.eq.s32.totalorder %s831_s21, 0 }
   0x9   : > { %p62_p3 = scmp.ne.s32.totalorder %s823_s19, %s819_s18  ;;  %p63_p4 = scmp.eq.s32.totalorder %s891_s22, 0 }
   0xa   : > { %s907_s27 = scalar_select %p47_p1, %s827_s20, %s49_s25  }
   0xb   : > { %p58_p5 = por %p57_p2, %p56_p0  ;;  %p909_p6 = por %p63_p4, %p62_p3 }
   0xc   : > { %p149_p7 = scmp.eq.s32.totalorder %s891_s22, 1  ;;  %p155_p8 = scmp.eq.s32.totalorder %s618_s23, 1 }
   0xd   : > { %s1049_s28 = scalar_select %p909_p6, 1, 0 }
   0xe   : > { %p697_p10 = scmp.lt.s32.totalorder %s831_s21, 2  ;;  %p916_p11 = por %p149_p7, %p56_p0 }
   0xf   : > { %p920_p12 = por %p155_p8, %p62_p3  ;;  %s187_s6 = sand.u32 1, %s827_s20  }
  0x10   : > { %s1050_s29 = scalar_select %p916_p11, 1, 0 }
  0x11   : > { %s1051_s30 = scalar_select %p920_p12, 1, 0 }
  0x12   : > { %s621_s7 = sshll.u32 %s831_s21, 6  ;;  %s683_s8 = smul.u32 12, %s187_s6 }
  0x13   : > { %s929_s11 = scalar_lea.hbm %s1042_s1, %s621_s7  ;;  %p931_p13 = pnand %p697_p10, %p58_p5 }
  0x14   : > { %s191_s13 = scalar_lea.vmem [#allocation2], %s683_s8  ;;  %s938_s15 = scalar_lea.sflag [#allocation3], %s187_s6 }
  0x15   : > { %s197_s14 = sshll.u32 %s191_s13, 4  ;;  %s739_s16 = scalar_lea.hbm %s929_s11, 192  ;;  %s935_s14 = int_to_ptr.vmem [resolvable:$true] %s197_s14 }
  0x16   : > { %p740_p1 = scmp.ne.s32.totalorder %s929_s11, %s739_s16  ;;  %p741_p2 = pneg %p931_p13 }
  0x17   : > { %s744_s25 = scalar_lea.hbm %s1042_s1, 384  ;;  %p745_p5 = scmp.lt.s32.totalorder %s929_s11, %s1042_s1 }
  0x18   : > { %p742_p3 = pnand %p741_p2, %p740_p1  ;;  %p746_p7 = scmp.lt.s32.totalorder %s744_s25, %s739_s16 }
  0x1a   : > { %p743_p4 = pneg %p742_p3  ;;  %p747_p8 = por %p746_p7, %p745_p5 }
  0x1c   : > { %p748_p10 = pnand %p747_p8, %p743_p4 }
  0x1e   : > { %751 = shalt.err (!%p748_p10)
}
  0x1f   : > { %s752_s6 = scalar_lea.vmem %s935_s14, 192  ;;  %s833_s8 = smov [#allocation2]  }
  0x20   : > { %p753_p9 = scmp.ne.s32.totalorder %s935_s14, %s752_s6  ;;  %s757_s9 = sshll.u32 %s833_s8, 4  ;;  %s758_s9 = int_to_ptr.vmem [resolvable:$false] %s757_s9 }
  0x21   : > { %s759_s10 = scalar_lea.vmem %s758_s9, 384  ;;  %p760_p3 = scmp.lt.s32.totalorder %s935_s14, %s758_s9 }
  0x22   : > { %p755_p0 = pnand %p753_p9, %p741_p2  ;;  %p761_p12 = scmp.lt.s32.totalorder %s759_s10, %s752_s6 }
  0x24   : > { %p756_p1 = pneg %p755_p0  ;;  %p762_p11 = por %p761_p12, %p760_p3 }
  0x26   : > { %p763_p6 = pnand %p762_p11, %p756_p1 }
  0x28   : > { %766 = shalt.err (!%p763_p6)
}
  0x29   : > { %s834_s13 = smov 128   ;;  %s835_s16 = smov 64  }
  0x2a   : > { %s836_s17 = smov 4   ;;  %p205_p9 = scmp.lt.s32.totalorder %s831_s21, 3 }
  0x2b   : > { %692 = dma.hbm_to_vmem [thread:$0]  (!%p931_p13), %s929_s11, 192, %s935_s14, %s938_s15, %s834_s13, %s835_s16, %s836_s17  }
  0x2c   : > { %p1053_p0 = scmp.ge.s32.totalorder %s831_s21, 1 }
  0x2e   : > { %p206_p2 = pnand %p1053_p0, %p205_p9 }
  0x2f   : > { %s963_s23 = sand.u32 (!%p206_p2), 1, %s823_s19   ;;  %p1054_p6 = scmp.ne.s32.totalorder (!%p206_p2), %s1049_s28, 0 }
  0x30   : > { %209 = sbr.rel (%p206_p2) target bundleno = 481 (0x1e1), region = 40  ;;  %s212_s26 = scalar_lea.sflag (!%p206_p2), [#allocation3], %s963_s23 }
  0x31   : > { %s684_s25 = smul.u32 (!%p206_p2), 12, %s963_s23 }
  0x33   : > { %s215_s7 = scalar_lea.vmem (!%p206_p2), [#allocation2], %s684_s25 }
  0x35   : > { %810 = dma.done.wait (%p1054_p6), %s212_s26, 192  }
  0x36   : > { %812 = vsyncadd (%p1054_p6), %s212_s26, 4294967104  ;;  %v837_v0 = vmov 0.0   ;;  %vm838_vm0 = vmmov 0   ;;  %s624_s11 = sshll.u32 %s891_s22, 3  ;;  %vm268_vm1 = vcmask 130048   ;;  %v736_v1 = vld [vmem:[%s1041_s0] sm:$0xff]  }
  0x37   : > { %659 = vmatprep.subr.bf16.mxu1 %v837_v0  ;;  %661 = vmatprep.mubr.msk.bf16.mxu1 %vm838_vm0, %v837_v0  ;;  %vm332_vm2 = vcmask 1043456   ;;  %v737_v2 = vld [vmem:[%s215_s7] sm:$0xff]   ;;  %s246_s15 = sshra.s32 %s624_s11, 3  ;;  %v738_v3 = vld [vmem:[%s215_s7 + $0x8] ss:$0 sps:$4 sm:$0xff]   ;;  %vm328_vm3 = vcmask 64512  }
  0x38   : > { %653 = vmatprep.subr.bf16.mxu0 %v736_v1  ;;  %v326_v4 = vld [vmem:[%s1044_s3] sm:$0xf]  ;;  %655 = vmatprep.mubr.msk.bf16.mxu0 %vm268_vm1, %v737_v2  ;;  %s625_s8 = sshll.u32 %s246_s15, 2  ;;  %v635_v7 = vld [vmem:[%s1043_s2 + $0x8] sm:$0xf]  ;;  %s623_s12 = sshll.u32 %s963_s23, 2 }
  0x39   : > { %654 = vmatpush3.bf16.msra.mxu0 %v736_v1  ;;  %v380_v5 = vsel %vm332_vm2, %v326_v4, 0  ;;  %s249_s13 = scalar_lea.vmem %s1041_s0, %s625_s8  ;;  %v477_v8 = vsel %vm332_vm2, %v635_v7, 0  ;;  %v327_v9 = vld [vmem:[%s1043_s2] sm:$0xf]  ;;  %v633_v12 = vld [vmem:[%s1043_s2 + $0x4] sm:$0xf] }
  0x3a   : > { %665 = vmatprep.subr.bf16.mxu0 %v837_v0  ;;  %v250_v6 = vld [vmem:[%s249_s13] sm:$0xf]  ;;  %v334_v10 = vsel %vm332_vm2, %v327_v9, 0  ;;  %v428_v16 = vsel %vm332_vm2, %v633_v12, 0  ;;  %s639_s6 = sshll.u32 %s891_s22, 6  ;;  %s241_s28 = scalar_lea.vmem [#allocation5], %s623_s12 }
  0x3b   : > { %660 = vmatpush3.bf16.msra.mxu1 %v334_v10  ;;  %v637_v35 = vld [vmem:[%s1045_s4] ss:$0 sm:$0xff]  ;;  %s546_s8 = sshll.u32 %s241_s28, 4  ;;  %vm530_vm4 = vcmask 257024   ;;  %s544_s13 = scalar_lea.hbm %s1046_s5, %s639_s6  ;;  %s547_s8 = int_to_ptr.vmem [resolvable:$true] %s546_s8 }
  0x3c   : > { %656 = vmatmul.mubr.msk.bf16.vlgmr.msra.gmra.mxu0 %vm268_vm1, %v738_v3  ;;  %671 = vmatprep.subr.bf16.mxu1 %v837_v0  ;;  %s533_s16 = scalar_lea.sflag [#allocation4], %s963_s23  ;;  %s767_s17 = scalar_lea.vmem %s547_s8, 64 }
  0x3d   : > { %666 = vmatpush3.bf16.msra.mxu0 %v380_v5  ;;  %667 = vmatprep.mubr.msk.bf16.mxu0 %vm838_vm0, %v837_v0  ;;  %p768_p11 = scmp.ne.s32.totalorder %s547_s8, %s767_s17  ;;  %p1055_p12 = scmp.ne.s32.totalorder %s1050_s29, 0 }
  0x3e   : > { %677 = vmatprep.subr.bf16.mxu0 %v837_v0  ;;  %s839_s25 = smov [#allocation5]  }
  0x3f   : > { %p769_p13 = pnand %p768_p11, %p1055_p12  ;;  %s771_s26 = sshll.u32 %s839_s25, 4  ;;  %s772_s26 = int_to_ptr.vmem [resolvable:$false] %s771_s26 }
  0x40   : > { %s773_s22 = scalar_lea.vmem %s772_s26, 128  ;;  %p774_p5 = scmp.lt.s32.totalorder %s547_s8, %s772_s26 }
  0x41   : > { %p770_p4 = pneg %p769_p13  ;;  %p775_p7 = scmp.lt.s32.totalorder %s773_s22, %s767_s17 }
  0x43   : > { %p776_p8 = por %p775_p7, %p774_p5 }
  0x44   : > { %668 = vmatmul.mubr.msk.bf16.vlgmr.msra.gmra.mxu0 %vm328_vm3, %v250_v6 }
  0x45   : > { %679 = vmatprep.mubr.msk.bf16.mxu0 %vm838_vm0, %v837_v0  ;;  %678 = vmatpush3.bf16.msra.mxu0 %v477_v8  ;;  %p777_p10 = pnand %p776_p8, %p770_p4 }
  0xfc   : > { %v657_v11 = vpop.f32.mrf.mxu0 }
  0xfd   : > { %v325_v13 = vpack.c.bf16 %v657_v11, %v657_v11 }
  0xfe   : > { %v309_v14 = vpop.f32.mrf.mxu0 }
  0xff   : > { %v323_v15 = vpack.c.bf16 %v309_v14, %v309_v14  ;;  %680 = vmatmul.mubr.msk.bf16.vlgmr.msra.gmra.mxu0 %vm328_vm3, %v325_v13 }
 0x100   : > { %v658_v17 = vpop.f32.mrf.mxu0 }
 0x101   : > { %662 = vmatmul.mubr.msk.bf16.vlgmr.msra.gmra.mxu1 %vm328_vm3, %v323_v15 }
 0x102   : > { %672 = vmatpush3.bf16.msra.mxu1 %v428_v16  ;;  %v312_v18 = vpop.f32.mrf.mxu0  ;;  %673 = vmatprep.mubr.msk.bf16.mxu1 %vm838_vm0, %v837_v0 }
 0x103   : > { %v324_v21 = vpack.c.bf16 %v312_v18, %v312_v18 }
 0x104   : > { %v416_v19 = vpop.f32.mrf.mxu0 }
 0x106   : > { %v669_v20 = vpop.f32.mrf.mxu0 }
 0x108   : > { %v419_v22 = vpop.f32.mrf.mxu0 }
 0x109   : > { %674 = vmatmul.mubr.msk.bf16.vlgmr.msra.gmra.mxu1 %vm328_vm3, %v324_v21 }
 0x10a   : > { %v670_v23 = vpop.f32.mrf.mxu0 }
 0x1bf   : > { %v513_v24 = vpop.f32.mrf.mxu0 }
 0x1c1   : > { %v370_v25 = vpop.f32.mrf.mxu1  ;;  %v681_v26 = vpop.f32.mrf.mxu0 }
 0x1c2   : > { %v417_v32 = vadd.f32 %v416_v19, %v370_v25 }
 0x1c3   : > { %v663_v27 = vpop.f32.mrf.mxu1  ;;  %v516_v28 = vpop.f32.mrf.mxu0 }
 0x1c5   : > { %v373_v29 = vpop.f32.mrf.mxu1  ;;  %v682_v30 = vpop.f32.mrf.mxu0 }
 0x1c7   : > { %v664_v31 = vpop.f32.mrf.mxu1 }
 0x1c9   : > { %v464_v33 = vpop.f32.mrf.mxu1 }
 0x1ca   : > { %v470_v34 = vadd.f32 %v464_v33, %v417_v32 }
 0x1cb   : > { %v675_v36 = vpop.f32.mrf.mxu1 }
 0x1cc   : > { %v519_v37 = vadd.f32 %v513_v24, %v470_v34 }
 0x1cd   : > { %v467_v38 = vpop.f32.mrf.mxu1 }
 0x1ce   : > { %v527_v39 = vadd.f32 %v637_v35, %v519_v37 }
 0x1cf   : > { %v676_v40 = vpop.f32.mrf.mxu1 }
 0x1d0   : > { %v528_v41 = vmax.f32 %v527_v39, 0.0 }
 0x1d2   : > { %v529_v42 = vpack.c.bf16 %v528_v41, %v528_v41 }
 0x1d4   : > { %531 = vst.msk [vmem:[%s241_s28] sm:$0xf] %vm530_vm4, %v529_v42 }
 0x1d5   : > { %780 = shalt.err (!%p777_p10)
}
 0x1d6   : > { %s781_s7 = scalar_lea.hbm %s544_s13, 64  ;;  %s785_s12 = scalar_lea.hbm %s1046_s5, 128 }
 0x1d7   : > { %p782_p1 = scmp.ne.s32.totalorder %s544_s13, %s781_s7  ;;  %p786_p0 = scmp.lt.s32.totalorder %s544_s13, %s1046_s5 }
 0x1d8   : > { %p787_p2 = scmp.lt.s32.totalorder %s785_s12, %s781_s7 }
 0x1d9   : > { %p783_p3 = pnand %p782_p1, %p1055_p12 }
 0x1da   : > { %p788_p6 = por %p787_p2, %p786_p0 }
 0x1db   : > { %p784_p9 = pneg %p783_p3 }
 0x1dd   : > { %p789_p11 = pnand %p788_p6, %p784_p9 }
 0x1df   : > { %792 = shalt.err (!%p789_p11)
}
 0x1e0   : > { %687 = dma.vmem_to_hbm [thread:$0]  (%p1055_p12), %s547_s8, 64, %s544_s13, %s533_s16  }
 0x1e1 PF: > { %s558_s6 = sand.u32 1, %s819_s18   ;;  %p1056_p13 = scmp.ne.s32.totalorder %s1051_s30, 0 }
 0x1e2   : > { %p1057_p4 = scmp.ge.s32.totalorder %s831_s21, 2  ;;  %s559_s28 = scalar_lea.sflag [#allocation4], %s558_s6 }
 0x1e4   : > { %p694_p5 = pnand %p1057_p4, %p1056_p13 }
 0x1e6   : > { %p695_p7 = pneg %p694_p5 }
 0x1e8   : > { %814 = dma.done.wait (%p695_p7), %s559_s28, 64  }
 0x1e9   : > { %816 = vsyncadd (%p695_p7), %s559_s28, 4294967232  ;;  %p18_p8 = scmp.ge.s32.totalorder %s895_s24, 4   ;;  %s1058_s18 = smov %s823_s19 }
 0x1ea   : > { %s1059_s19 = smov %s827_s20  ;;  %s1060_s20 = smov %s907_s27 }
 0x1eb   : > { %s1061_s21 = smov %s895_s24  ;;  %20 = sbr.rel (!%p18_p8) target bundleno = 5 (0x5), region = 88 }
 0x1f0   :  { %564 = vsyncpa [#allocation3], 1 }
 0x1f1   :  { %566 = vsyncpa [#allocation3 + $0x1], 1 }
 0x1f2   :  { %567 = vsyncpa [#allocation4], 1 }
 0x1f3   :  { %569 = vsyncpa [#allocation4 + $0x1], 1 }

</bundles_post_ra>
